<compile_context>
chip_gen: v5e
topology: v5e:2x2
jax: 0.10.0
libtpu: 0.0.40
codegen_flags: <defaults>
</compile_context>

<pallas_src>
import jax
import jax.numpy as jnp
from jax.experimental import pallas as pl
from jax.experimental.pallas import tpu as pltpu


def _round_up(x, m):
    return (x + m - 1) // m * m


# ---------------------------------------------------------------------------
# Pallas kernel: fused 3-layer MLP, batch in the lane dimension.
# ---------------------------------------------------------------------------
def _mlp_kernel(x_ref, w1_ref, b1_ref, w2_ref, b2_ref, w3_ref, b3_ref, o_ref):
    # x_ref: (2E, TILE_B) bf16; weights in PyTorch (out, in) layout; biases (out, 1).
    x = x_ref[...].astype(jnp.float32)                           # bf16 -> f32 (VPU)
    h1 = jnp.dot(w1_ref[...], x, preferred_element_type=jnp.float32) + b1_ref[...]
    h1 = jnp.maximum(h1, 0.0)                                    # (64, TILE_B)
    h2 = jnp.dot(w2_ref[...], h1, preferred_element_type=jnp.float32) + b2_ref[...]
    h2 = jnp.maximum(h2, 0.0)                                    # (16, TILE_B)
    # TODO(synk): on v5e, if a bundle dump shows the MXU slot saturated, replace this
    # M=1 dot with a VPU broadcast-multiply + sublane reduce.
    o_ref[...] = (jnp.dot(w3_ref[...], h2, preferred_element_type=jnp.float32)
                  + b3_ref[...])                                 # (1, TILE_B) lane-dense


def _resident(shape):
    # Constant block index -> DMA'd once, stays VMEM-resident across all batch tiles.
    # Single-buffered: never revisited, so a second pipeline buffer is pure waste.
    try:
        return pl.BlockSpec(shape, lambda i: (0, 0), pipeline_mode=pl.Buffered(1))
    except TypeError:  # older jax without pipeline_mode=
        return pl.BlockSpec(shape, lambda i: (0, 0))


def recommender_mlp(x_t, w1, b1c, w2, b2c, w3, b3c, *, tile_b):
    """x_t: (2E, B_pad) bf16, batch in lanes (B_pad multiple of tile_b) -> (1, B_pad) f32."""
    K, B = x_t.shape
    assert B % tile_b == 0 and tile_b % 128 == 0
    num_tiles = B // tile_b
    H1, H2 = w1.shape[0], w2.shape[0]

    param_bytes = 4 * sum(a.size for a in (w1, b1c, w2, b2c, w3, b3c))
    cost = pl.CostEstimate(
        flops=2 * B * (K * H1 + H1 * H2 + H2 * 1),
        transcendentals=0,
        bytes_accessed=x_t.dtype.itemsize * K * B + 4 * B + param_bytes,
    )

    return pl.pallas_call(
        _mlp_kernel,
        out_shape=jax.ShapeDtypeStruct((1, B), jnp.float32),
        grid=(num_tiles,),
        in_specs=[
            pl.BlockSpec((K, tile_b), lambda i: (0, i)),   # fused [user|item] emb, batch-tiled
            _resident(w1.shape), _resident(b1c.shape),
            _resident(w2.shape), _resident(b2c.shape),
            _resident(w3.shape), _resident(b3c.shape),
        ],
        out_specs=pl.BlockSpec((1, tile_b), lambda i: (0, i)),
        compiler_params=pltpu.CompilerParams(
            dimension_semantics=("parallel",),       # shards batch tiles on v7x's 2 TCs
            vmem_limit_bytes=48 * 1024 * 1024,       # sized for v7x's 64 MiB VMEM
        ),
        cost_estimate=cost,
    )(x_t, w1, b1c, w2, b2c, w3, b3c)


# ---------------------------------------------------------------------------
# Tile sizing: lane-aligned, <= max_tile_b (v7x VMEM budget), >= 2 tiles when possible.
# ---------------------------------------------------------------------------
def _pick_tile_b(batch, max_tile_b):
    b_lane = _round_up(batch, 128)
    if b_lane <= 128:
        return 128
    # Enough tiles to respect max_tile_b, and >= 2 so both v7x TensorCores get work.
    num_tiles = max(2, -(-b_lane // max_tile_b))
    return _round_up(-(-batch // num_tiles), 128)


# ---------------------------------------------------------------------------
# Full forward pass (embedding gather stays in XLA; MLP fused in Pallas).
# ---------------------------------------------------------------------------
def recommender_forward(params, user_indices, item_indices, *,
                        max_tile_b=16384, input_dtype=jnp.bfloat16):
    B = user_indices.shape[0]
    tile_b = _pick_tile_b(B, max_tile_b)
    b_pad = _round_up(B, tile_b)
    if b_pad != B:
        pad = b_pad - B
        user_indices = jnp.pad(user_indices, (0, pad))   # pad with valid index 0;
        item_indices = jnp.pad(item_indices, (0, pad))   # padded lanes sliced off below

    # Contiguous row gathers (80 B rows), then one small transpose to batch-in-lanes.
    # The torch.cat never hits HBM as a (B, 2E) f32 tensor on its own pass: we concat
    # the two (B, E) gathers, quantize to bf16 and transpose in one fused XLA op.
    ue = jnp.take(params["user_embedding"], user_indices, axis=0)        # (B_pad, E)
    ie = jnp.take(params["item_embedding"], item_indices, axis=0)        # (B_pad, E)
    x_t = jnp.concatenate([ue, ie], axis=-1).astype(input_dtype).T       # (2E, B_pad) bf16

    b1c = params["b1"].reshape(-1, 1)
    b2c = params["b2"].reshape(-1, 1)
    b3c = params["b3"].reshape(-1, 1)

    out = recommender_mlp(x_t, params["w1"], b1c, params["w2"], b2c,
                          params["w3"], b3c, tile_b=tile_b)              # (1, B_pad)
    # torch: out.squeeze() — returns (B,); for B==1 torch would yield a 0-d scalar.
    return out[0, :B]


def init_params(key, num_users, num_items, embedding_size=20):
    ks = jax.random.split(key, 8)

    def lin(kw, fan_out, fan_in):       # PyTorch nn.Linear layout: (out, in)
        bound = 1.0 / jnp.sqrt(fan_in)
        return jax.random.uniform(kw, (fan_out, fan_in), jnp.float32, -bound, bound)

    def bias(kb, fan_out, fan_in):
        bound = 1.0 / jnp.sqrt(fan_in)
        return jax.random.uniform(kb, (fan_out,), jnp.float32, -bound, bound)

    return {
        "user_embedding": jax.random.normal(ks[0], (num_users, embedding_size), jnp.float32),
        "item_embedding": jax.random.normal(ks[1], (num_items, embedding_size), jnp.float32),
        "w1": lin(ks[2], 64, 2 * embedding_size), "b1": bias(ks[3], 64, 2 * embedding_size),
        "w2": lin(ks[4], 16, 64),                 "b2": bias(ks[5], 16, 64),
        "w3": lin(ks[6], 1, 16),                  "b3": bias(ks[7], 1, 16),
    }


if __name__ == "__main__":
    key = jax.random.PRNGKey(0)
    num_users, num_items, embedding_size, batch = 10, 15, 20, 8

    k_params, k_u, k_i = jax.random.split(key, 3)
    params = init_params(k_params, num_users, num_items, embedding_size)

    user_idx = jax.random.randint(k_u, (batch,), 0, num_users, dtype=jnp.int32)
    item_idx = jax.random.randint(k_i, (batch,), 0, num_items, dtype=jnp.int32)

    out = recommender_forward(params, user_idx, item_idx)
    jax.block_until_ready(out)

    # Pure-JAX reference (PyTorch semantics: y = x @ W.T + b), with the same bf16
    # quantization of the gathered embeddings that the kernel path applies.
    ue = jnp.take(params["user_embedding"], user_idx, axis=0)
    ie = jnp.take(params["item_embedding"], item_idx, axis=0)
    xr = jnp.concatenate([ue, ie], axis=-1).astype(jnp.bfloat16).astype(jnp.float32)
    h1 = jnp.maximum(xr @ params["w1"].T + params["b1"], 0.0)
    h2 = jnp.maximum(h1 @ params["w2"].T + params["b2"], 0.0)
    ref = (h2 @ params["w3"].T + params["b3"])[:, 0]

    assert out.shape == (batch,)
    assert jnp.allclose(out, ref, atol=1e-4, rtol=1e-4), (
        f"max abs err {jnp.max(jnp.abs(out - ref))}")

    print("KERNEL_OK")
</pallas_src>

<mosaic_0001>
module attributes {stable_mosaic.version = 11 : i64} {
  func.func @_mlp_kernel(%arg0: i32, %arg1: memref<40x128xbf16, #tpu.memory_space<vmem>>, %arg2: memref<64x40xf32, #tpu.memory_space<vmem>>, %arg3: memref<64x1xf32, #tpu.memory_space<vmem>>, %arg4: memref<16x64xf32, #tpu.memory_space<vmem>>, %arg5: memref<16x1xf32, #tpu.memory_space<vmem>>, %arg6: memref<1x16xf32, #tpu.memory_space<vmem>>, %arg7: memref<1x1xf32, #tpu.memory_space<vmem>>, %arg8: memref<1x128xf32, #tpu.memory_space<vmem>>) attributes {dimension_semantics = [#tpu.dimension_semantics<parallel>], iteration_bounds = array<i64: 1>, scalar_prefetch = 0 : i64, scratch_operands = 0 : i64, tpu.core_type = #tpu.core_type<tc>, window_params = [{transform_indices = @transform_0, window_bounds = array<i64: 40, 128>}, {pipeline_mode = #tpu.pipeline_mode<synchronous>, transform_indices = @transform_1, window_bounds = array<i64: 64, 40>}, {pipeline_mode = #tpu.pipeline_mode<synchronous>, transform_indices = @transform_2, window_bounds = array<i64: 64, 1>}, {pipeline_mode = #tpu.pipeline_mode<synchronous>, transform_indices = @transform_3, window_bounds = array<i64: 16, 64>}, {pipeline_mode = #tpu.pipeline_mode<synchronous>, transform_indices = @transform_4, window_bounds = array<i64: 16, 1>}, {pipeline_mode = #tpu.pipeline_mode<synchronous>, transform_indices = @transform_5, window_bounds = array<i64: 1, 16>}, {pipeline_mode = #tpu.pipeline_mode<synchronous>, transform_indices = @transform_6, window_bounds = array<i64: 1, 1>}, {transform_indices = @transform_7, window_bounds = array<i64: 1, 128>}]} {
    %c0 = arith.constant 0 : index
    %c0_0 = arith.constant 0 : index
    %0 = vector.load %arg1[%c0, %c0_0] : memref<40x128xbf16, #tpu.memory_space<vmem>>, vector<40x128xbf16>
    %1 = arith.extf %0 : vector<40x128xbf16> to vector<40x128xf32>
    %c0_1 = arith.constant 0 : index
    %c0_2 = arith.constant 0 : index
    %2 = vector.load %arg2[%c0_1, %c0_2] : memref<64x40xf32, #tpu.memory_space<vmem>>, vector<64x40xf32>
    %cst = arith.constant dense<0.000000e+00> : vector<64x128xf32>
    %3 = tpu.matmul %2, %1, %cst {dimension_numbers = #tpu.dot_dimension_numbers<[1], [0], [0], [1], [0, 0, 1, 1], [], []>} : vector<64x40xf32>, vector<40x128xf32>, vector<64x128xf32> -> vector<64x128xf32>
    %c0_3 = arith.constant 0 : index
    %c0_4 = arith.constant 0 : index
    %4 = vector.load %arg3[%c0_3, %c0_4] : memref<64x1xf32, #tpu.memory_space<vmem>>, vector<64x1xf32>
    %5 = vector.broadcast %4 : vector<64x1xf32> to vector<64x128xf32>
    %6 = arith.addf %3, %5 : vector<64x128xf32>
    %cst_5 = arith.constant 0.000000e+00 : f32
    %7 = vector.broadcast %cst_5 : f32 to vector<64x128xf32>
    %8 = arith.maximumf %6, %7 : vector<64x128xf32>
    %c0_6 = arith.constant 0 : index
    %c0_7 = arith.constant 0 : index
    %9 = vector.load %arg4[%c0_6, %c0_7] : memref<16x64xf32, #tpu.memory_space<vmem>>, vector<16x64xf32>
    %cst_8 = arith.constant dense<0.000000e+00> : vector<16x128xf32>
    %10 = tpu.matmul %9, %8, %cst_8 {dimension_numbers = #tpu.dot_dimension_numbers<[1], [0], [0], [1], [0, 0, 1, 1], [], []>} : vector<16x64xf32>, vector<64x128xf32>, vector<16x128xf32> -> vector<16x128xf32>
    %c0_9 = arith.constant 0 : index
    %c0_10 = arith.constant 0 : index
    %11 = vector.load %arg5[%c0_9, %c0_10] : memref<16x1xf32, #tpu.memory_space<vmem>>, vector<16x1xf32>
    %12 = vector.broadcast %11 : vector<16x1xf32> to vector<16x128xf32>
    %13 = arith.addf %10, %12 : vector<16x128xf32>
    %cst_11 = arith.constant 0.000000e+00 : f32
    %14 = vector.broadcast %cst_11 : f32 to vector<16x128xf32>
    %15 = arith.maximumf %13, %14 : vector<16x128xf32>
    %c0_12 = arith.constant 0 : index
    %c0_13 = arith.constant 0 : index
    %16 = vector.load %arg6[%c0_12, %c0_13] : memref<1x16xf32, #tpu.memory_space<vmem>>, vector<1x16xf32>
    %cst_14 = arith.constant dense<0.000000e+00> : vector<1x128xf32>
    %17 = tpu.matmul %16, %15, %cst_14 {dimension_numbers = #tpu.dot_dimension_numbers<[1], [0], [0], [1], [0, 0, 1, 1], [], []>} : vector<1x16xf32>, vector<16x128xf32>, vector<1x128xf32> -> vector<1x128xf32>
    %c0_15 = arith.constant 0 : index
    %c0_16 = arith.constant 0 : index
    %18 = vector.load %arg7[%c0_15, %c0_16] : memref<1x1xf32, #tpu.memory_space<vmem>>, vector<1x1xf32>
    %19 = vector.broadcast %18 : vector<1x1xf32> to vector<1x128xf32>
    %20 = arith.addf %17, %19 : vector<1x128xf32>
    %c0_17 = arith.constant 0 : index
    %c0_18 = arith.constant 0 : index
    %21 = vector.load %arg8[%c0_17, %c0_18] : memref<1x128xf32, #tpu.memory_space<vmem>>, vector<1x128xf32>
    tpu.vector_store %arg8[%c0_17, %c0_18], %20 {strides = array<i32>} : memref<1x128xf32, #tpu.memory_space<vmem>>, vector<1x128xf32>,
    return
  }
  func.func @transform_0(%arg0: i32) -> (i32, i32) {
    %c0_i32 = arith.constant 0 : i32
    %c0_i32_0 = arith.constant 0 : i32
    return %c0_i32, %arg0 : i32, i32
  }
  func.func @transform_1(%arg0: i32) -> (i32, i32) {
    %c0_i32 = arith.constant 0 : i32
    %c0_i32_0 = arith.constant 0 : i32
    %c0_i32_1 = arith.constant 0 : i32
    return %c0_i32, %c0_i32_0 : i32, i32
  }
  func.func @transform_2(%arg0: i32) -> (i32, i32) {
    %c0_i32 = arith.constant 0 : i32
    %c0_i32_0 = arith.constant 0 : i32
    %c0_i32_1 = arith.constant 0 : i32
    return %c0_i32, %c0_i32_0 : i32, i32
  }
  func.func @transform_3(%arg0: i32) -> (i32, i32) {
    %c0_i32 = arith.constant 0 : i32
    %c0_i32_0 = arith.constant 0 : i32
    %c0_i32_1 = arith.constant 0 : i32
    return %c0_i32, %c0_i32_0 : i32, i32
  }
  func.func @transform_4(%arg0: i32) -> (i32, i32) {
    %c0_i32 = arith.constant 0 : i32
    %c0_i32_0 = arith.constant 0 : i32
    %c0_i32_1 = arith.constant 0 : i32
    return %c0_i32, %c0_i32_0 : i32, i32
  }
  func.func @transform_5(%arg0: i32) -> (i32, i32) {
    %c0_i32 = arith.constant 0 : i32
    %c0_i32_0 = arith.constant 0 : i32
    %c0_i32_1 = arith.constant 0 : i32
    return %c0_i32, %c0_i32_0 : i32, i32
  }
  func.func @transform_6(%arg0: i32) -> (i32, i32) {
    %c0_i32 = arith.constant 0 : i32
    %c0_i32_0 = arith.constant 0 : i32
    %c0_i32_1 = arith.constant 0 : i32
    return %c0_i32, %c0_i32_0 : i32, i32
  }
  func.func @transform_7(%arg0: i32) -> (i32, i32) {
    %c0_i32 = arith.constant 0 : i32
    %c0_i32_0 = arith.constant 0 : i32
    return %c0_i32, %arg0 : i32, i32
  }
}

</mosaic_0001>

<bundles_post_ra>
// kernel: tpu_custom_call.1
= control target key start
LH: loop header
LB: loop body
LE: loop exit
PB: predicated region body
PF: predicated region fallthrough
CT: control target
= control target key end

     0   :  { %s453_s0 = inlined_call_operand.vmem [shape: bf16[40,128], index: 0, kind: input, shape index: {}]   ;;  %s454_s1 = inlined_call_operand.vmem [shape: f32[64,40], index: 1, kind: input, shape index: {}]   ;;  %s455_s2 = inlined_call_operand.vmem [shape: f32[64,1], index: 2, kind: input, shape index: {}]   ;;  %s456_s3 = inlined_call_operand.vmem [shape: f32[16,64], index: 3, kind: input, shape index: {}]   ;;  %s457_s4 = inlined_call_operand.vmem [shape: f32[16,1], index: 4, kind: input, shape index: {}]   ;;  %s458_s5 = inlined_call_operand.vmem [shape: f32[1,16], index: 5, kind: input, shape index: {}]   ;;  %s459_s6 = inlined_call_operand.<no memory space> [shape: f32[1,1], index: 6, kind: input, shape index: {}]   ;;  %s460_s7 = inlined_call_operand.hbm [shape: f32[1,128], index: 7, kind: output, shape index: {}]  }
   0x1   :  { %v12_v0 = vstv %s459_s6 }
   0x2   :  { %13 = vst [vmem:[#allocation2] sm:$0x1] %v12_v0 }
   0x3   :  { %v33_v1 = vld [vmem:[%s453_s0 + $0x10] sm:$0xf]  ;;  %v283_v2 = vld [vmem:[%s453_s0 + $0x8] sm:$0xff]   ;;  %v325_v5 = vmov 0   ;;  %v54_v6 = vld [vmem:[%s455_s2 + $0x38] sm:$0xff] }
   0x4   :  { %v38_v3 = vunpack.c.l.bf16 %v33_v1  ;;  %v282_v4 = vunpack.c.h.bf16 %v283_v2  ;;  %296 = vset.pattern.permute.xlu0 %v325_v5  ;;  %297 = vset.pattern.permute.xlu1 %v325_v5  ;;  %v276_v7 = vld [vmem:[%s453_s0] sm:$0xff]   ;;  %v52_v8 = vld [vmem:[%s455_s2 + $0x28] sm:$0xff]  ;;  %v281_v9 = vunpack.c.l.bf16 %v283_v2  ;;  %v50_v11 = vld [vmem:[%s455_s2 + $0x18] sm:$0xff] }
   0x5   :  { %92 = vperm.xlu0 %296, %v54_v6   ;;  %298 = vset.pattern.permute.xlu2 %v325_v5  ;;  %v278_v10 = vunpack.c.h.bf16 %v276_v7  ;;  %v277_v12 = vunpack.c.l.bf16 %v276_v7  ;;  %v53_v13 = vld [vmem:[%s455_s2 + $0x30] sm:$0xff] }
   0x6   :  { %285 = vmatpush.msra.mxu3 %v38_v3  ;;  %284 = vmatpush.msra.mxu2 %v38_v3 }
   0x7   :  { %131 = vmatpush.msra.mxu0 %v38_v3  ;;  %82 = vperm.xlu1 %297, %v52_v8  }
   0x8   :  { %287 = vmatpush.msra.mxu3 %v282_v4  ;;  %286 = vmatpush.msra.mxu2 %v282_v4 }
   0x9   :  { %132 = vmatpush.msra.mxu0 %v282_v4 }
   0xa   :  { %289 = vmatpush.msra.mxu3 %v281_v9  ;;  %288 = vmatpush.msra.mxu2 %v281_v9 }
   0xb   :  { %14 = vsyncpa [#allocation4], 0  ;;  %133 = vmatpush.msra.mxu0 %v281_v9  ;;  %72 = vperm.xlu2 %298, %v50_v11   ;;  %v44_v14 = vld [vmem:[%s454_s1 + $0x28] sm:$0xff]  ;;  %vm95_vm0 = vcmask 326656   ;;  %v42_v15 = vld [vmem:[%s454_s1 + $0x18] sm:$0xff]  ;;  %vm183_vm1 = vcmask 523264  }
   0xc   :  { %291 = vmatpush.msra.mxu3 %v278_v10  ;;  %290 = vmatpush.msra.mxu2 %v278_v10  ;;  %v51_v16 = vld [vmem:[%s455_s2 + $0x20] sm:$0xff]  ;;  %v49_v18 = vld [vmem:[%s455_s2 + $0x10] sm:$0xff]  ;;  %v48_v19 = vld [vmem:[%s455_s2 + $0x8] sm:$0xff]  ;;  %vm223_vm2 = vcmask 130048   ;;  %s326_s21 = smov [#allocation3]   ;;  %s255_s24 = sshll.u32 %s460_s7, 4  ;;  %s256_s24 = int_to_ptr.hbm [resolvable:$true] %s255_s24 }
   0xd   :  { %134 = vmatpush.msra.mxu0 %v278_v10  ;;  %87 = vperm.xlu0 %296, %v53_v13   ;;  %v39_v17 = vld [vmem:[%s454_s1] sm:$0xff]  ;;  %v45_v20 = vld [vmem:[%s454_s1 + $0x30] sm:$0xff]  ;;  %v40_v23 = vld [vmem:[%s454_s1 + $0x8] sm:$0xff] }
   0xe   :  { %293 = vmatpush.msra.mxu3 %v277_v12  ;;  %292 = vmatpush.msra.mxu2 %v277_v12  ;;  %v43_v21 = vld [vmem:[%s454_s1 + $0x20] sm:$0xff]  ;;  %v172_v24 = vld [vmem:[%s457_s4 + $0x8] sm:$0xff]  ;;  %v46_v26 = vld [vmem:[%s454_s1 + $0x38] sm:$0xff] }
   0xf   :  { %269 = vmatmul.msk.f32.vlgmr.msra.gmra.mxu3 %vm95_vm0, %v44_v14  ;;  %267 = vmatmul.msk.f32.vlgmr.msra.gmra.mxu2 %vm95_vm0, %v42_v15  ;;  %v47_v22 = vld [vmem:[%s455_s2] sm:$0xff]  ;;  %v41_v28 = vld [vmem:[%s454_s1 + $0x10] sm:$0xff]  ;;  %v170_v62 = vld [vmem:[%s456_s3 + $0x8] sm:$0xff] }
  0x10   :  { %135 = vmatpush.msra.mxu0 %v277_v12  ;;  %77 = vperm.xlu1 %297, %v51_v16   ;;  %v171_v25 = vld [vmem:[%s457_s4] sm:$0xff] }
  0x11   :  { %264 = vmatmul.msk.f32.vlgmr.msra.gmra.mxu0 %vm95_vm0, %v39_v17  ;;  %v216_v27 = vld [vmem:[#allocation2] sm:$0x1] }
  0x12   :  { %v169_v61 = vld [vmem:[%s456_s3] sm:$0xff]  ;;  %s253_s3 = sshll.u32 %s326_s21, 4  ;;  %s254_s3 = int_to_ptr.vmem [resolvable:$true] %s253_s3 }
  0x13   :  { %67 = vperm.xlu2 %298, %v49_v18   ;;  %v215_v7 = vld [vmem:[%s458_s5] sm:$0x1] }
  0x15   :  { %62 = vperm.xlu0 %296, %v48_v19  }
  0x17   :  { %270 = vmatmul.msk.f32.gmra.mxu3 %vm95_vm0, %v45_v20  ;;  %268 = vmatmul.msk.f32.gmra.mxu2 %vm95_vm0, %v43_v21 }
  0x18   :  { %57 = vperm.xlu1 %297, %v47_v22  }
  0x19   :  { %265 = vmatmul.msk.f32.gmra.mxu0 %vm95_vm0, %v40_v23 }
  0x1b   :  { %180 = vperm.xlu2 %298, %v172_v24  }
  0x1d   :  { %175 = vperm.xlu0 %296, %v171_v25  }
  0x1f   :  { %271 = vmatmul.msk.f32.gmra.mxu3 %vm95_vm0, %v46_v26 }
  0x20   :  { %219 = vperm.xlu1 %297, %v216_v27  }
  0x21   :  { %266 = vmatmul.msk.f32.gmra.mxu0 %vm95_vm0, %v41_v28 }
  0x65   :  { %v73_v36 = vpop.permute.xlu2 %72 }
  0x6d   :  { %v68_v50 = vpop.permute.xlu2 %67 }
  0x75   :  { %v181_v0 = vpop.permute.xlu2 %180 }
  0x77   :  { %v93_v31 = vpop.permute.xlu0 %92 }
  0x79   :  { %v83_v32 = vpop.permute.xlu1 %82 }
  0x7f   :  { %v88_v37 = vpop.permute.xlu0 %87 }
  0x82   :  { %v78_v41 = vpop.permute.xlu1 %77 }
  0x87   :  { %v63_v53 = vpop.permute.xlu0 %62 }
  0x8a   :  { %v58_v56 = vpop.permute.xlu1 %57 }
  0x8e   :  { %v137_v30 = vpop.f32.mrf.mxu0 }
  0x8f   :  { %v138_v57 = vadd.f32 %v137_v30, %v58_v56  ;;  %v176_v1 = vpop.permute.xlu0 %175 }
  0x91   :  { %v161_v60 = vmax.f32 %v138_v57, 0.0 }
  0x92   :  { %v152_v29 = vpop.f32.mrf.mxu3  ;;  %v146_v33 = vpop.f32.mrf.mxu2 }
  0x93   :  { %v153_v43 = vadd.f32 %v152_v29, %v83_v32  ;;  %v147_v49 = vadd.f32 %v146_v33, %v73_v36  ;;  %v220_v8 = vpop.permute.xlu1 %219 }
  0x94   :  { %v222_v9 = vperm.slane %v220_v8, 0 }
  0x95   :  { %v166_v48 = vmax.f32 %v153_v43, 0.0  ;;  %v164_v54 = vmax.f32 %v147_v49, 0.0 }
  0x96   :  { %v140_v35 = vpop.f32.mrf.mxu0 }
  0x97   :  { %v141_v55 = vadd.f32 %v140_v35, %v63_v53 }
  0x99   :  { %v162_v59 = vmax.f32 %v141_v55, 0.0 }
  0x9a   :  { %v155_v34 = vpop.f32.mrf.mxu3  ;;  %v149_v42 = vpop.f32.mrf.mxu2 }
  0x9b   :  { %v156_v39 = vadd.f32 %v155_v34, %v88_v37  ;;  %v150_v46 = vadd.f32 %v149_v42, %v78_v41 }
  0x9d   :  { %v167_v45 = vmax.f32 %v156_v39, 0.0  ;;  %v165_v51 = vmax.f32 %v150_v46, 0.0 }
  0x9e   :  { %v143_v47 = vpop.f32.mrf.mxu0 }
  0x9f   :  { %v144_v52 = vadd.f32 %v143_v47, %v68_v50 }
  0xa1   :  { %v163_v58 = vmax.f32 %v144_v52, 0.0 }
  0xa2   :  { %v158_v38 = vpop.f32.mrf.mxu3 }
  0xa3   :  { %v159_v40 = vadd.f32 %v158_v38, %v93_v31 }
  0xa5   :  { %v168_v44 = vmax.f32 %v159_v40, 0.0 }
  0xa7   :  { %198 = vmatpush.msra.mxu1 %v168_v44 }
  0xa9   :  { %199 = vmatpush.msra.mxu1 %v167_v45 }
  0xab   :  { %200 = vmatpush.msra.mxu1 %v166_v48 }
  0xad   :  { %201 = vmatpush.msra.mxu1 %v165_v51 }
  0xaf   :  { %202 = vmatpush.msra.mxu1 %v164_v54 }
  0xb1   :  { %203 = vmatpush.msra.mxu1 %v163_v58 }
  0xb3   :  { %204 = vmatpush.msra.mxu1 %v162_v59 }
  0xb5   :  { %205 = vmatpush.msra.mxu1 %v161_v60 }
  0xb6   :  { %272 = vmatmul.msk.f32.vlgmr.msra.gmra.mxu1 %vm183_vm1, %v169_v61 }
  0xbe   :  { %273 = vmatmul.msk.f32.gmra.mxu1 %vm183_vm1, %v170_v62 }
 0x133   :  { %v207_v63 = vpop.f32.mrf.mxu1 }
 0x134   :  { %v208_v3 = vadd.f32 %v207_v63, %v176_v1 }
 0x136   :  { %v213_v6 = vmax.f32 %v208_v3, 0.0 }
 0x13b   :  { %v210_v2 = vpop.f32.mrf.mxu1 }
 0x13c   :  { %v211_v4 = vadd.f32 %v210_v2, %v181_v0 }
 0x13e   :  { %v214_v5 = vmax.f32 %v211_v4, 0.0 }
 0x140   :  { %241 = vmatpush.msrb.mxu2 %v214_v5 }
 0x142   :  { %242 = vmatpush.msrb.mxu2 %v213_v6 }
 0x143   :  { %274 = vmatmul.msk.f32.vlgmr.msrb.gmra.mxu2 %vm223_vm2, %v215_v7 }
 0x1c6   :  { %v244_v10 = vpop.f32.mrf.mxu2 }
 0x1c7   :  { %v245_v11 = vadd.f32 %v244_v10, %v222_v9 }
 0x1c9   :  { %247 = vst [vmem:[#allocation3] sm:$0x1] %v245_v11 }
 0x1ca   :  { %258 = dma.vmem_to_hbm [thread:$0]  %s254_s3, 16, %s256_s24, [#allocation4]  }
 0x1cb   :  { %323 = dma.done.wait [#allocation4], 16  }
 0x1cc   :  { %324 = vsyncadd [#allocation4], 4294967280 }
 0x1cd   :  { %263 = vsyncpa [#allocation4], 1 }

</bundles_post_ra>
